<compile_context>
chip_gen: v6e
topology: v6e:2x2x1
jax: 0.10.0
libtpu: 0.0.40
codegen_flags: <defaults>
</compile_context>

<pallas_src>
import functools
import math

import jax
import jax.numpy as jnp
from jax import lax
from jax.experimental import pallas as pl
from jax.experimental.pallas import tpu as pltpu

LN_EPS = 1e-5


def _round_up(n, m):
    return ((n + m - 1) // m) * m


def residual_block_kernel(x_ref, w1_ref, b1_ref, g1_ref, be1_ref,
                          w2_ref, b2_ref, g2_ref, be2_ref, o_ref,
                          *, d_real, d_pad):
    # Mask of "real" feature lanes (padded lanes must stay exactly zero).
    mask = lax.broadcasted_iota(jnp.int32, (1, d_pad), 1) < d_real
    inv_d = 1.0 / d_real

    def masked_layer_norm(h, gamma, beta):
        mu = jnp.sum(h, axis=-1, keepdims=True) * inv_d
        c = jnp.where(mask, h - mu, 0.0)
        var = jnp.sum(c * c, axis=-1, keepdims=True) * inv_d   # biased var (PyTorch LN)
        return c * lax.rsqrt(var + LN_EPS) * gamma + beta

    x = x_ref[...].astype(jnp.float32)

    # Linear 1 on the MXU: bf16 operands, f32 accumulation.
    h = jnp.dot(x.astype(jnp.bfloat16), w1_ref[...],
                preferred_element_type=jnp.float32) + b1_ref[...]
    h = masked_layer_norm(h, g1_ref[...], be1_ref[...])
    # Exact (erf-based) GELU — matches nn.GELU() default.
    h = 0.5 * h * (1.0 + lax.erf(h * (1.0 / math.sqrt(2.0))))
    # Dropout: identity in eval mode.
    # Linear 2 on the MXU.
    h = jnp.dot(h.astype(jnp.bfloat16), w2_ref[...],
                preferred_element_type=jnp.float32) + b2_ref[...]
    h = masked_layer_norm(h, g2_ref[...], be2_ref[...])
    # Outer dropout: identity in eval mode; residual add in f32.
    o_ref[...] = (x + h).astype(o_ref.dtype)


def residual_block(x, params, *, tm=256):
    """x: (B, S, D) float32. params: dict of f32 weights. Returns (B, S, D)."""
    B, S, D = x.shape
    N = B * S

    # Lane-dense feature dim and row tile sized to the (8,128) layout.
    Dp = _round_up(D, 128)
    tm_eff = min(_round_up(tm, 8), _round_up(N, 8))
    Np = _round_up(N, tm_eff)

    # Pad rows/features with zeros (padded lanes stay zero through the whole block).
    x2d = jnp.pad(x.reshape(N, D), ((0, Np - N), (0, Dp - D)))

    def pad_mat(w):
        return jnp.pad(w, ((0, Dp - D), (0, Dp - D))).astype(jnp.bfloat16)

    def pad_vec(v):
        return jnp.pad(v, (0, Dp - D)).reshape(1, Dp).astype(jnp.float32)

    w1, w2 = pad_mat(params["w1"]), pad_mat(params["w2"])
    b1r, g1r, be1r = pad_vec(params["b1"]), pad_vec(params["g1"]), pad_vec(params["be1"])
    b2r, g2r, be2r = pad_vec(params["b2"]), pad_vec(params["g2"]), pad_vec(params["be2"])

    row_spec = pl.BlockSpec((tm_eff, Dp), lambda i: (i, 0))
    mat_spec = pl.BlockSpec((Dp, Dp), lambda i: (0, 0))
    vec_spec = pl.BlockSpec((1, Dp), lambda i: (0, 0))

    # Explicit VMEM budget: 2 bf16 weights + 6 f32 vectors + f32 in/out row tiles,
    # all double-buffered by the default pipeline, plus margin. Capped at 48 MiB so the
    # same config is valid on v7x (64 MiB physical) as well as v5e/v6e (128 MiB).
    weight_vmem = 2 * 2 * Dp * Dp * 2
    vec_vmem = 2 * 6 * Dp * 4
    tile_vmem = 2 * 2 * tm_eff * Dp * 4
    vmem_limit = min(max(2 * (weight_vmem + vec_vmem + tile_vmem) + (4 << 20),
                         32 << 20), 48 << 20)

    cost = pl.CostEstimate(
        flops=4 * Np * Dp * Dp + 12 * Np * Dp,
        transcendentals=Np * Dp + 2 * Np,
        bytes_accessed=2 * Np * Dp * 4 + 2 * Dp * Dp * 2 + 6 * Dp * 4,
    )

    kernel = functools.partial(residual_block_kernel, d_real=D, d_pad=Dp)

    out2d = pl.pallas_call(
        kernel,
        out_shape=jax.ShapeDtypeStruct((Np, Dp), x.dtype),
        grid_spec=pltpu.PrefetchScalarGridSpec(
            num_scalar_prefetch=0,
            grid=(Np // tm_eff,),
            in_specs=[row_spec,
                      mat_spec, vec_spec, vec_spec, vec_spec,
                      mat_spec, vec_spec, vec_spec, vec_spec],
            out_specs=row_spec,
        ),
        compiler_params=pltpu.CompilerParams(
            dimension_semantics=("parallel",),
            vmem_limit_bytes=vmem_limit),
        cost_estimate=cost,
    )(x2d, w1, b1r, g1r, be1r, w2, b2r, g2r, be2r)

    return out2d[:N, :D].reshape(B, S, D)


def init_params(key, dim):
    """Deterministic init. Linear: uniform(-1/sqrt(dim), 1/sqrt(dim)) like PyTorch;
    LayerNorm: gamma=1, beta=0."""
    k1, k2, k3, k4 = jax.random.split(key, 4)
    bound = 1.0 / math.sqrt(dim)
    return {
        "w1": jax.random.uniform(k1, (dim, dim), jnp.float32, -bound, bound),
        "b1": jax.random.uniform(k2, (dim,), jnp.float32, -bound, bound),
        "g1": jnp.ones((dim,), jnp.float32),
        "be1": jnp.zeros((dim,), jnp.float32),
        "w2": jax.random.uniform(k3, (dim, dim), jnp.float32, -bound, bound),
        "b2": jax.random.uniform(k4, (dim,), jnp.float32, -bound, bound),
        "g2": jnp.ones((dim,), jnp.float32),
        "be2": jnp.zeros((dim,), jnp.float32),
    }


def _reference(x, p):
    """Pure-JAX f32 reference (independent of the kernel's masked LayerNorm)."""
    def ln(h, g, b):
        mu = h.mean(-1, keepdims=True)
        var = ((h - mu) ** 2).mean(-1, keepdims=True)
        return (h - mu) / jnp.sqrt(var + LN_EPS) * g + b

    h = x @ p["w1"] + p["b1"]
    h = ln(h, p["g1"], p["be1"])
    h = 0.5 * h * (1.0 + lax.erf(h / jnp.sqrt(2.0)))
    h = h @ p["w2"] + p["b2"]
    h = ln(h, p["g2"], p["be2"])
    return x + h


if __name__ == "__main__":
    B, S, D = 2, 8, 32
    key = jax.random.PRNGKey(0)
    kx, kp = jax.random.split(key)
    x = jax.random.normal(kx, (B, S, D), jnp.float32)
    params = init_params(kp, D)

    out = residual_block(x, params)
    out = jax.block_until_ready(out)

    ref = _reference(x, params)
    assert out.shape == (B, S, D)
    # Kernel feeds the MXU bf16 operands (f32 accumulation), so compare against the
    # pure-f32 reference with a bf16-appropriate tolerance.
    assert jnp.allclose(out, ref, atol=5e-2, rtol=5e-2), "mismatch vs JAX reference"
    print("KERNEL_OK")
</pallas_src>

<mosaic_0001>
module attributes {stable_mosaic.version = 11 : i64} {
  func.func @residual_block_kernel(%arg0: i32, %arg1: memref<16x128xf32, #tpu.memory_space<vmem>>, %arg2: memref<128x128xbf16, #tpu.memory_space<vmem>>, %arg3: memref<1x128xf32, #tpu.memory_space<vmem>>, %arg4: memref<1x128xf32, #tpu.memory_space<vmem>>, %arg5: memref<1x128xf32, #tpu.memory_space<vmem>>, %arg6: memref<128x128xbf16, #tpu.memory_space<vmem>>, %arg7: memref<1x128xf32, #tpu.memory_space<vmem>>, %arg8: memref<1x128xf32, #tpu.memory_space<vmem>>, %arg9: memref<1x128xf32, #tpu.memory_space<vmem>>, %arg10: memref<16x128xf32, #tpu.memory_space<vmem>>) attributes {dimension_semantics = [#tpu.dimension_semantics<parallel>], iteration_bounds = array<i64: 1>, scalar_prefetch = 0 : i64, scratch_operands = 0 : i64, tpu.core_type = #tpu.core_type<tc>, window_params = [{transform_indices = @transform_0, window_bounds = array<i64: 16, 128>}, {pipeline_mode = #tpu.pipeline_mode<synchronous>, transform_indices = @transform_1, window_bounds = array<i64: 128, 128>}, {pipeline_mode = #tpu.pipeline_mode<synchronous>, transform_indices = @transform_2, window_bounds = array<i64: 1, 128>}, {pipeline_mode = #tpu.pipeline_mode<synchronous>, transform_indices = @transform_3, window_bounds = array<i64: 1, 128>}, {pipeline_mode = #tpu.pipeline_mode<synchronous>, transform_indices = @transform_4, window_bounds = array<i64: 1, 128>}, {pipeline_mode = #tpu.pipeline_mode<synchronous>, transform_indices = @transform_5, window_bounds = array<i64: 128, 128>}, {pipeline_mode = #tpu.pipeline_mode<synchronous>, transform_indices = @transform_6, window_bounds = array<i64: 1, 128>}, {pipeline_mode = #tpu.pipeline_mode<synchronous>, transform_indices = @transform_7, window_bounds = array<i64: 1, 128>}, {pipeline_mode = #tpu.pipeline_mode<synchronous>, transform_indices = @transform_8, window_bounds = array<i64: 1, 128>}, {transform_indices = @transform_9, window_bounds = array<i64: 16, 128>}]} {
    %0 = tpu.iota {dimensions = array<i32: 1>} : vector<1x128xi32>
    %c32_i32 = arith.constant 32 : i32
    %1 = vector.broadcast %c32_i32 : i32 to vector<1x128xi32>
    %2 = arith.cmpi slt, %0, %1 : vector<1x128xi32>
    %c0 = arith.constant 0 : index
    %c0_0 = arith.constant 0 : index
    %3 = vector.load %arg1[%c0, %c0_0] : memref<16x128xf32, #tpu.memory_space<vmem>>, vector<16x128xf32>
    %4 = arith.truncf %3 : vector<16x128xf32> to vector<16x128xbf16>
    %c0_1 = arith.constant 0 : index
    %c0_2 = arith.constant 0 : index
    %5 = vector.load %arg2[%c0_1, %c0_2] : memref<128x128xbf16, #tpu.memory_space<vmem>>, vector<128x128xbf16>
    %cst = arith.constant dense<0.000000e+00> : vector<16x128xf32>
    %6 = tpu.matmul %4, %5, %cst {dimension_numbers = #tpu.dot_dimension_numbers<[1], [0], [0], [1], [0, 0, 1, 1], [], []>} : vector<16x128xbf16>, vector<128x128xbf16>, vector<16x128xf32> -> vector<16x128xf32>
    %c0_3 = arith.constant 0 : index
    %c0_4 = arith.constant 0 : index
    %7 = vector.load %arg3[%c0_3, %c0_4] : memref<1x128xf32, #tpu.memory_space<vmem>>, vector<1x128xf32>
    %8 = vector.broadcast %7 : vector<1x128xf32> to vector<16x128xf32>
    %9 = arith.addf %6, %8 : vector<16x128xf32>
    %c0_5 = arith.constant 0 : index
    %c0_6 = arith.constant 0 : index
    %10 = vector.load %arg4[%c0_5, %c0_6] : memref<1x128xf32, #tpu.memory_space<vmem>>, vector<1x128xf32>
    %c0_7 = arith.constant 0 : index
    %c0_8 = arith.constant 0 : index
    %11 = vector.load %arg5[%c0_7, %c0_8] : memref<1x128xf32, #tpu.memory_space<vmem>>, vector<1x128xf32>
    %cst_9 = arith.constant dense<0.000000e+00> : vector<16xf32>
    %12 = vector.multi_reduction <add>, %9, %cst_9 [1] : vector<16x128xf32> to vector<16xf32>
    %13 = vector.shape_cast %12 : vector<16xf32> to vector<16x1xf32>
    %cst_10 = arith.constant 3.125000e-02 : f32
    %14 = vector.broadcast %cst_10 : f32 to vector<16x1xf32>
    %15 = arith.mulf %13, %14 : vector<16x1xf32>
    %16 = vector.broadcast %15 : vector<16x1xf32> to vector<16x128xf32>
    %17 = arith.subf %9, %16 : vector<16x128xf32>
    %cst_11 = arith.constant 0.000000e+00 : f32
    %18 = vector.shape_cast %2 : vector<1x128xi1> to vector<1x128xi1>
    %19 = vector.broadcast %18 : vector<1x128xi1> to vector<16x128xi1>
    %20 = vector.broadcast %cst_11 : f32 to vector<16x128xf32>
    %21 = arith.select %19, %17, %20 : vector<16x128xi1>, vector<16x128xf32>
    %22 = arith.mulf %21, %21 : vector<16x128xf32>
    %cst_12 = arith.constant dense<0.000000e+00> : vector<16xf32>
    %23 = vector.multi_reduction <add>, %22, %cst_12 [1] : vector<16x128xf32> to vector<16xf32>
    %24 = vector.shape_cast %23 : vector<16xf32> to vector<16x1xf32>
    %cst_13 = arith.constant 3.125000e-02 : f32
    %25 = vector.broadcast %cst_13 : f32 to vector<16x1xf32>
    %26 = arith.mulf %24, %25 : vector<16x1xf32>
    %cst_14 = arith.constant 9.99999974E-6 : f32
    %27 = vector.broadcast %cst_14 : f32 to vector<16x1xf32>
    %28 = arith.addf %26, %27 : vector<16x1xf32>
    %29 = math.rsqrt %28 : vector<16x1xf32>
    %30 = vector.broadcast %29 : vector<16x1xf32> to vector<16x128xf32>
    %31 = arith.mulf %21, %30 : vector<16x128xf32>
    %32 = vector.broadcast %10 : vector<1x128xf32> to vector<16x128xf32>
    %33 = arith.mulf %31, %32 : vector<16x128xf32>
    %34 = vector.broadcast %11 : vector<1x128xf32> to vector<16x128xf32>
    %35 = arith.addf %33, %34 : vector<16x128xf32>
    %cst_15 = arith.constant 5.000000e-01 : f32
    %36 = vector.broadcast %cst_15 : f32 to vector<16x128xf32>
    %37 = arith.mulf %36, %35 : vector<16x128xf32>
    %cst_16 = arith.constant 0.707106769 : f32
    %38 = vector.broadcast %cst_16 : f32 to vector<16x128xf32>
    %39 = arith.mulf %35, %38 : vector<16x128xf32>
    %40 = math.erf %39 : vector<16x128xf32>
    %cst_17 = arith.constant 1.000000e+00 : f32
    %41 = vector.broadcast %cst_17 : f32 to vector<16x128xf32>
    %42 = arith.addf %41, %40 : vector<16x128xf32>
    %43 = arith.mulf %37, %42 : vector<16x128xf32>
    %44 = arith.truncf %43 : vector<16x128xf32> to vector<16x128xbf16>
    %c0_18 = arith.constant 0 : index
    %c0_19 = arith.constant 0 : index
    %45 = vector.load %arg6[%c0_18, %c0_19] : memref<128x128xbf16, #tpu.memory_space<vmem>>, vector<128x128xbf16>
    %cst_20 = arith.constant dense<0.000000e+00> : vector<16x128xf32>
    %46 = tpu.matmul %44, %45, %cst_20 {dimension_numbers = #tpu.dot_dimension_numbers<[1], [0], [0], [1], [0, 0, 1, 1], [], []>} : vector<16x128xbf16>, vector<128x128xbf16>, vector<16x128xf32> -> vector<16x128xf32>
    %c0_21 = arith.constant 0 : index
    %c0_22 = arith.constant 0 : index
    %47 = vector.load %arg7[%c0_21, %c0_22] : memref<1x128xf32, #tpu.memory_space<vmem>>, vector<1x128xf32>
    %48 = vector.broadcast %47 : vector<1x128xf32> to vector<16x128xf32>
    %49 = arith.addf %46, %48 : vector<16x128xf32>
    %c0_23 = arith.constant 0 : index
    %c0_24 = arith.constant 0 : index
    %50 = vector.load %arg8[%c0_23, %c0_24] : memref<1x128xf32, #tpu.memory_space<vmem>>, vector<1x128xf32>
    %c0_25 = arith.constant 0 : index
    %c0_26 = arith.constant 0 : index
    %51 = vector.load %arg9[%c0_25, %c0_26] : memref<1x128xf32, #tpu.memory_space<vmem>>, vector<1x128xf32>
    %cst_27 = arith.constant dense<0.000000e+00> : vector<16xf32>
    %52 = vector.multi_reduction <add>, %49, %cst_27 [1] : vector<16x128xf32> to vector<16xf32>
    %53 = vector.shape_cast %52 : vector<16xf32> to vector<16x1xf32>
    %cst_28 = arith.constant 3.125000e-02 : f32
    %54 = vector.broadcast %cst_28 : f32 to vector<16x1xf32>
    %55 = arith.mulf %53, %54 : vector<16x1xf32>
    %56 = vector.broadcast %55 : vector<16x1xf32> to vector<16x128xf32>
    %57 = arith.subf %49, %56 : vector<16x128xf32>
    %cst_29 = arith.constant 0.000000e+00 : f32
    %58 = vector.shape_cast %2 : vector<1x128xi1> to vector<1x128xi1>
    %59 = vector.broadcast %58 : vector<1x128xi1> to vector<16x128xi1>
    %60 = vector.broadcast %cst_29 : f32 to vector<16x128xf32>
    %61 = arith.select %59, %57, %60 : vector<16x128xi1>, vector<16x128xf32>
    %62 = arith.mulf %61, %61 : vector<16x128xf32>
    %cst_30 = arith.constant dense<0.000000e+00> : vector<16xf32>
    %63 = vector.multi_reduction <add>, %62, %cst_30 [1] : vector<16x128xf32> to vector<16xf32>
    %64 = vector.shape_cast %63 : vector<16xf32> to vector<16x1xf32>
    %cst_31 = arith.constant 3.125000e-02 : f32
    %65 = vector.broadcast %cst_31 : f32 to vector<16x1xf32>
    %66 = arith.mulf %64, %65 : vector<16x1xf32>
    %cst_32 = arith.constant 9.99999974E-6 : f32
    %67 = vector.broadcast %cst_32 : f32 to vector<16x1xf32>
    %68 = arith.addf %66, %67 : vector<16x1xf32>
    %69 = math.rsqrt %68 : vector<16x1xf32>
    %70 = vector.broadcast %69 : vector<16x1xf32> to vector<16x128xf32>
    %71 = arith.mulf %61, %70 : vector<16x128xf32>
    %72 = vector.broadcast %50 : vector<1x128xf32> to vector<16x128xf32>
    %73 = arith.mulf %71, %72 : vector<16x128xf32>
    %74 = vector.broadcast %51 : vector<1x128xf32> to vector<16x128xf32>
    %75 = arith.addf %73, %74 : vector<16x128xf32>
    %76 = arith.addf %3, %75 : vector<16x128xf32>
    %c0_33 = arith.constant 0 : index
    %c0_34 = arith.constant 0 : index
    %77 = vector.load %arg10[%c0_33, %c0_34] : memref<16x128xf32, #tpu.memory_space<vmem>>, vector<16x128xf32>
    tpu.vector_store %arg10[%c0_33, %c0_34], %76 {strides = array<i32>} : memref<16x128xf32, #tpu.memory_space<vmem>>, vector<16x128xf32>,
    return
  }
  func.func @transform_0(%arg0: i32) -> (i32, i32) {
    %c0_i32 = arith.constant 0 : i32
    %c0_i32_0 = arith.constant 0 : i32
    return %arg0, %c0_i32 : i32, i32
  }
  func.func @transform_1(%arg0: i32) -> (i32, i32) {
    %c0_i32 = arith.constant 0 : i32
    %c0_i32_0 = arith.constant 0 : i32
    %c0_i32_1 = arith.constant 0 : i32
    return %c0_i32, %c0_i32_0 : i32, i32
  }
  func.func @transform_2(%arg0: i32) -> (i32, i32) {
    %c0_i32 = arith.constant 0 : i32
    %c0_i32_0 = arith.constant 0 : i32
    %c0_i32_1 = arith.constant 0 : i32
    return %c0_i32, %c0_i32_0 : i32, i32
  }
  func.func @transform_3(%arg0: i32) -> (i32, i32) {
    %c0_i32 = arith.constant 0 : i32
    %c0_i32_0 = arith.constant 0 : i32
    %c0_i32_1 = arith.constant 0 : i32
    return %c0_i32, %c0_i32_0 : i32, i32
  }
  func.func @transform_4(%arg0: i32) -> (i32, i32) {
    %c0_i32 = arith.constant 0 : i32
    %c0_i32_0 = arith.constant 0 : i32
    %c0_i32_1 = arith.constant 0 : i32
    return %c0_i32, %c0_i32_0 : i32, i32
  }
  func.func @transform_5(%arg0: i32) -> (i32, i32) {
    %c0_i32 = arith.constant 0 : i32
    %c0_i32_0 = arith.constant 0 : i32
    %c0_i32_1 = arith.constant 0 : i32
    return %c0_i32, %c0_i32_0 : i32, i32
  }
  func.func @transform_6(%arg0: i32) -> (i32, i32) {
    %c0_i32 = arith.constant 0 : i32
    %c0_i32_0 = arith.constant 0 : i32
    %c0_i32_1 = arith.constant 0 : i32
    return %c0_i32, %c0_i32_0 : i32, i32
  }
  func.func @transform_7(%arg0: i32) -> (i32, i32) {
    %c0_i32 = arith.constant 0 : i32
    %c0_i32_0 = arith.constant 0 : i32
    %c0_i32_1 = arith.constant 0 : i32
    return %c0_i32, %c0_i32_0 : i32, i32
  }
  func.func @transform_8(%arg0: i32) -> (i32, i32) {
    %c0_i32 = arith.constant 0 : i32
    %c0_i32_0 = arith.constant 0 : i32
    %c0_i32_1 = arith.constant 0 : i32
    return %c0_i32, %c0_i32_0 : i32, i32
  }
  func.func @transform_9(%arg0: i32) -> (i32, i32) {
    %c0_i32 = arith.constant 0 : i32
    %c0_i32_0 = arith.constant 0 : i32
    return %arg0, %c0_i32 : i32, i32
  }
}

</mosaic_0001>

<bundles_post_ra>
// kernel: tpu_custom_call.1
= control target key start
LH: loop header
LB: loop body
LE: loop exit
PB: predicated region body
PF: predicated region fallthrough
CT: control target
= control target key end

     0   :  { %14 = vsyncpa [#allocation3], 0  ;;  %s761_s0 = inlined_call_operand.hbm [shape: f32[16,128], index: 0, kind: input, shape index: {}]   ;;  %s762_s1 = inlined_call_operand.hbm [shape: bf16[128,128], index: 1, kind: input, shape index: {}]   ;;  %s763_s2 = inlined_call_operand.vmem [shape: f32[1,128], index: 2, kind: input, shape index: {}]   ;;  %s764_s3 = inlined_call_operand.vmem [shape: f32[1,128], index: 3, kind: input, shape index: {}]   ;;  %s765_s4 = inlined_call_operand.vmem [shape: f32[1,128], index: 4, kind: input, shape index: {}]   ;;  %s766_s5 = inlined_call_operand.hbm [shape: bf16[128,128], index: 5, kind: input, shape index: {}]   ;;  %s767_s6 = inlined_call_operand.vmem [shape: f32[1,128], index: 6, kind: input, shape index: {}]   ;;  %s768_s7 = inlined_call_operand.vmem [shape: f32[1,128], index: 7, kind: input, shape index: {}]   ;;  %s769_s8 = inlined_call_operand.vmem [shape: f32[1,128], index: 8, kind: input, shape index: {}]   ;;  %s770_s9 = inlined_call_operand.hbm [shape: f32[16,128], index: 9, kind: output, shape index: {}]  }
   0x1   :  { %15 = vsyncpa [#allocation6], 0 }
   0x2   :  { %16 = vsyncpa [#allocation4], 0  ;;  %s628_s30 = smov [#allocation5]  }
   0x3   :  { %s34_s10 = sshll.u32 %s628_s30, 4  ;;  %s35_s10 = int_to_ptr.vmem [resolvable:$true] %s34_s10 }
   0x4   :  { %s550_s11 = scalar_lea.vmem %s35_s10, 1024  ;;  %p555_p1 = scmp.lt.s32.totalorder %s35_s10, %s35_s10 }
   0x5   :  { %p551_p0 = scmp.ne.s32.totalorder %s35_s10, %s550_s11  ;;  %p556_p2 = scmp.lt.s32.totalorder %s550_s11, %s550_s11 }
   0x7   :  { %p557_p3 = por %p556_p2, %p555_p1 }
   0x9   :  { %p558_p4 = pnand %p557_p3, %p551_p0 }
   0xb   :  { %561 = shalt.err (!%p558_p4)
}
   0xc   :  { %s629_s12 = smov 64   ;;  %s630_s13 = smov 4  }
   0xd   :  { %40 = dma.hbm_to_vmem [thread:$0]  %s762_s1, 1024, %s35_s10, [#allocation6], %s629_s12, %s629_s12, %s630_s13  }
   0xe   :  { %s631_s16 = smov [#allocation2]  }
   0xf   :  { %s22_s17 = sshll.u32 %s631_s16, 4  ;;  %s23_s17 = int_to_ptr.vmem [resolvable:$true] %s22_s17 }
  0x10   :  { %s570_s18 = scalar_lea.vmem %s23_s17, 256  ;;  %p575_p6 = scmp.lt.s32.totalorder %s23_s17, %s23_s17 }
  0x11   :  { %p571_p5 = scmp.ne.s32.totalorder %s23_s17, %s570_s18  ;;  %p576_p7 = scmp.lt.s32.totalorder %s570_s18, %s570_s18 }
  0x13   :  { %p577_p8 = por %p576_p7, %p575_p6 }
  0x15   :  { %p578_p9 = pnand %p577_p8, %p571_p5 }
  0x17   :  { %581 = shalt.err (!%p578_p9)
}
  0x18   :  { %s632_s19 = smov 128   ;;  %s633_s20 = smov 8  }
  0x19   :  { %28 = dma.hbm_to_vmem [thread:$0]  %s761_s0, 256, %s23_s17, [#allocation3], %s632_s19, %s632_s19, %s633_s20  }
  0x1a   :  { %s634_s1 = smov [#allocation7]  }
  0x1b   :  { %s52_s23 = sshll.u32 %s634_s1, 4  ;;  %s53_s23 = int_to_ptr.vmem [resolvable:$true] %s52_s23 }
  0x1c   :  { %s590_s24 = scalar_lea.vmem %s53_s23, 1024  ;;  %p595_p11 = scmp.lt.s32.totalorder %s53_s23, %s53_s23 }
  0x1d   :  { %p591_p10 = scmp.ne.s32.totalorder %s53_s23, %s590_s24  ;;  %p596_p12 = scmp.lt.s32.totalorder %s590_s24, %s590_s24 }
  0x1f   :  { %p597_p13 = por %p596_p12, %p595_p11 }
  0x21   :  { %p598_p0 = pnand %p597_p13, %p591_p10 }
  0x23   :  { %601 = shalt.err (!%p598_p0)
}
  0x24   :  { %58 = dma.hbm_to_vmem [thread:$0]  %s766_s5, 1024, %s53_s23, [#allocation6], %s629_s12, %s629_s12, %s630_s13  }
  0x25   :  { %622 = dma.done.wait [#allocation3], 256  }
  0x26   :  { %623 = vsyncadd [#allocation3], 4294967040 }
  0x27   :  { %624 = dma.done.wait [#allocation6], 2048  }
  0x28   :  { %625 = vsyncadd [#allocation6], 4294965248  ;;  %v635_v0 = vmov 0.0   ;;  %vm636_vm0 = vmmov 0   ;;  %v514_v1 = vld [vmem:[#allocation5 + $0x38] sm:$0xff]   ;;  %v515_v2 = vld [vmem:[#allocation5 + $0x30] sm:$0xff]   ;;  %v75_v19 = vlaneseq }
  0x29   :  { %464 = vmatprep.subr.bf16.mxu0 %v635_v0  ;;  %480 = vmatprep.mubr.msk.bf16.mxu0 %vm636_vm0, %v635_v0  ;;  %v516_v3 = vld [vmem:[#allocation5 + $0x28] sm:$0xff]   ;;  %v517_v4 = vld [vmem:[#allocation5 + $0x20] sm:$0xff]   ;;  %v518_v5 = vld [vmem:[#allocation5 + $0x18] sm:$0xff]   ;;  %s637_s12 = smov [#allocation8]  }
  0x2a   :  { %484 = vmatprep.subr.bf16.mxu1 %v635_v0  ;;  %500 = vmatprep.mubr.msk.bf16.mxu1 %vm636_vm0, %v635_v0  ;;  %v519_v6 = vld [vmem:[#allocation5 + $0x10] sm:$0xff]   ;;  %v520_v7 = vld [vmem:[#allocation5 + $0x8] sm:$0xff]   ;;  %v521_v8 = vld [vmem:[#allocation5] sm:$0xff]   ;;  %v720_v20 = vand.u32 127, %v75_v19  ;;  %s411_s13 = sshll.u32 %s637_s12, 4  ;;  %s412_s13 = int_to_ptr.vmem [resolvable:$true] %s411_s13 }
  0x2b   :  { %465 = vmatpush3.bf16.msra.mxu0 %v514_v1  ;;  %v710_v9 = vld [vmem:[#allocation2] sm:$0xff]  ;;  %v712_v10 = vld [vmem:[#allocation2 + $0x8] sm:$0xff]  ;;  %v524_v33 = vld [vmem:[#allocation7 + $0x28] sm:$0xff]   ;;  %p607_p2 = scmp.lt.s32.totalorder %s412_s13, %s412_s13 }
  0x2c   :  { %466 = vmatprep.subr.bf16.mxu0 %v635_v0  ;;  %v80_v11 = vpack.c.bf16 %v712_v10, %v710_v9  ;;  %v424_v12 = vld [vmem:[%s763_s2] ss:$0 sm:$0xff]  ;;  %vm77_vm1 = vcmp.lt.s32.totalorder %v720_v20, 32  ;;  %v522_v31 = vld [vmem:[#allocation7 + $0x38] sm:$0xff]   ;;  %v525_v34 = vld [vmem:[#allocation7 + $0x20] sm:$0xff]  }
  0x2d   :  { %485 = vmatpush3.bf16.msra.mxu1 %v522_v31  ;;  %v523_v32 = vld [vmem:[#allocation7 + $0x30] sm:$0xff]   ;;  %v526_v35 = vld [vmem:[#allocation7 + $0x18] sm:$0xff]   ;;  %v528_v37 = vld [vmem:[#allocation7 + $0x8] sm:$0xff]  }
  0x2e   :  { %486 = vmatprep.subr.bf16.mxu1 %v635_v0  ;;  %v527_v36 = vld [vmem:[#allocation7 + $0x10] sm:$0xff]   ;;  %v529_v38 = vld [vmem:[#allocation7] sm:$0xff]  }
  0x2f   :  { %467 = vmatpush3.bf16.msra.mxu0 %v515_v2  ;;  %v433_v46 = vld [vmem:[%s764_s3] ss:$0 sm:$0xff] }
  0x30   :  { %468 = vmatprep.subr.bf16.mxu0 %v635_v0  ;;  %v434_v48 = vld [vmem:[%s765_s4] ss:$0 sm:$0xff] }
  0x31   :  { %487 = vmatpush3.bf16.msra.mxu1 %v523_v32  ;;  %v435_v2 = vld [vmem:[%s767_s6] ss:$0 sm:$0xff] }
  0x32   :  { %488 = vmatprep.subr.bf16.mxu1 %v635_v0  ;;  %v445_v20 = vld [vmem:[%s769_s8] ss:$0 sm:$0xff] }
  0x33   :  { %469 = vmatpush3.bf16.msra.mxu0 %v516_v3 }
  0x34   :  { %470 = vmatprep.subr.bf16.mxu0 %v635_v0 }
  0x35   :  { %489 = vmatpush3.bf16.msra.mxu1 %v524_v33 }
  0x36   :  { %490 = vmatprep.subr.bf16.mxu1 %v635_v0 }
  0x37   :  { %471 = vmatpush3.bf16.msra.mxu0 %v517_v4 }
  0x38   :  { %472 = vmatprep.subr.bf16.mxu0 %v635_v0 }
  0x39   :  { %491 = vmatpush3.bf16.msra.mxu1 %v525_v34 }
  0x3a   :  { %492 = vmatprep.subr.bf16.mxu1 %v635_v0 }
  0x3b   :  { %473 = vmatpush3.bf16.msra.mxu0 %v518_v5 }
  0x3c   :  { %474 = vmatprep.subr.bf16.mxu0 %v635_v0 }
  0x3d   :  { %493 = vmatpush3.bf16.msra.mxu1 %v526_v35 }
  0x3e   :  { %494 = vmatprep.subr.bf16.mxu1 %v635_v0 }
  0x3f   :  { %475 = vmatpush3.bf16.msra.mxu0 %v519_v6 }
  0x40   :  { %476 = vmatprep.subr.bf16.mxu0 %v635_v0 }
  0x41   :  { %495 = vmatpush3.bf16.msra.mxu1 %v527_v36 }
  0x42   :  { %496 = vmatprep.subr.bf16.mxu1 %v635_v0 }
  0x43   :  { %477 = vmatpush3.bf16.msra.mxu0 %v520_v7 }
  0x44   :  { %478 = vmatprep.subr.bf16.mxu0 %v635_v0 }
  0x45   :  { %497 = vmatpush3.bf16.msra.mxu1 %v528_v37 }
  0x46   :  { %498 = vmatprep.subr.bf16.mxu1 %v635_v0 }
  0x47   :  { %479 = vmatpush3.bf16.msra.mxu0 %v521_v8 }
  0x49   :  { %499 = vmatpush3.bf16.msra.mxu1 %v529_v38 }
  0x4a   :  { %481 = vmatmul.mubr.bf16.vlgmr.msra.gmra.mxu0 %v80_v11 }
 0x10a   :  { %v186_v13 = vpop.f32.mrf.mxu0 }
 0x10b   :  { %v187_v14 = vadd.f32 %v424_v12, %v186_v13 }
 0x10c   :  { %v482_v15 = vpop.f32.mrf.mxu0 }
 0x10d   :  { %195 = vadd.xlane.f32.xlu0 %v187_v14 }
 0x10e   :  { %v189_v16 = vpop.f32.mrf.mxu0 }
 0x10f   :  { %v190_v17 = vadd.f32 %v424_v12, %v189_v16 }
 0x110   :  { %v483_v18 = vpop.f32.mrf.mxu0 }
 0x111   :  { %197 = vadd.xlane.f32.xlu0 %v190_v17 }
 0x196   :  { %v196_v21 = vpop.xlane.xlu0 %195 }
 0x197   :  { %v199_v22 = vmul.f32 0.03125, %v196_v21 }
 0x199   :  { %v201_v23 = vsub.f32 %v187_v14, %v199_v22 }
 0x19a   :  { %v198_v24 = vpop.xlane.xlu0 %197 }
 0x19b   :  { %v200_v25 = vmul.f32 0.03125, %v198_v24  ;;  %v205_v26 = vsel %vm77_vm1, %v201_v23, 0.0 }
 0x19c   :  { %v207_v27 = vmul.f32 %v205_v26, %v205_v26 }
 0x19d   :  { %v202_v28 = vsub.f32 %v190_v17, %v200_v25 }
 0x19e   :  { %209 = vadd.xlane.f32.xlu1 %v207_v27 }
 0x19f   :  { %v206_v29 = vsel %vm77_vm1, %v202_v28, 0.0 }
 0x1a0   :  { %v208_v30 = vmul.f32 %v206_v29, %v206_v29 }
 0x1a2   :  { %211 = vadd.xlane.f32.xlu1 %v208_v30 }
 0x227   :  { %v210_v39 = vpop.xlane.xlu1 %209 }
 0x228   :  { %v213_v40 = vmul.f32 0.03125, %v210_v39 }
 0x22a   :  { %v215_v41 = vadd.f32 1e-05, %v213_v40 }
 0x22b   :  { %v212_v42 = vpop.xlane.xlu1 %211 }
 0x22c   :  { %530 = vrsqrt.f32 %v215_v41  ;;  %v214_v43 = vmul.f32 0.03125, %v212_v42 }
 0x22e   :  { %v216_v44 = vadd.f32 1e-05, %v214_v43 }
 0x230   :  { %532 = vrsqrt.f32 %v216_v44 }
 0x239   :  { %v531_v45 = vpop.eup %530 }
 0x23a   :  { %v219_v47 = vmul.f32 %v531_v45, %v205_v26 }
 0x23c   :  { %v227_v49 = vmul.f32 %v433_v46, %v219_v47 }
 0x23d   :  { %v533_v50 = vpop.eup %532 }
 0x23e   :  { %v220_v51 = vmul.f32 %v533_v50, %v206_v29  ;;  %v235_v52 = vadd.f32 %v434_v48, %v227_v49  ;;  %v444_v29 = vld [vmem:[%s768_s7] ss:$0 sm:$0xff]  ;;  %s602_s7 = scalar_lea.vmem %s412_s13, 256 }
 0x23f   :  { %p603_p1 = scmp.ne.s32.totalorder %s412_s13, %s602_s7  ;;  %p608_p3 = scmp.lt.s32.totalorder %s602_s7, %s602_s7 }
 0x240   :  { %v228_v53 = vmul.f32 %v433_v46, %v220_v51  ;;  %v239_v54 = vmul.f32 0.70710677, %v235_v52  ;;  %v237_v60 = vmul.f32 0.5, %v235_v52 }
 0x241   :  { %p609_p4 = por %p608_p3, %p607_p2 }
 0x242   :  { %v236_v55 = vadd.f32 %v434_v48, %v228_v53  ;;  %534 = verf.f32 %v239_v54 }
 0x243   :  { %p610_p5 = pnand %p609_p4, %p603_p1 }
 0x244   :  { %v240_v56 = vmul.f32 0.70710677, %v236_v55  ;;  %v238_v61 = vmul.f32 0.5, %v236_v55 }
 0x246   :  { %536 = verf.f32 %v240_v56 }
 0x24f   :  { %v535_v57 = vpop.eup %534 }
 0x250   :  { %v243_v58 = vadd.f32 1.0, %v535_v57 }
 0x252   :  { %v245_v63 = vmul.f32 %v243_v58, %v237_v60 }
 0x253   :  { %v537_v59 = vpop.eup %536 }
 0x254   :  { %v244_v62 = vadd.f32 1.0, %v537_v59 }
 0x256   :  { %v246_v0 = vmul.f32 %v244_v62, %v238_v61 }
 0x258   :  { %v247_v1 = vpack.c.bf16 %v246_v0, %v245_v63 }
 0x25a   :  { %501 = vmatmul.mubr.bf16.vlgmr.msra.gmra.mxu1 %v247_v1 }
 0x31a   :  { %v353_v3 = vpop.f32.mrf.mxu1 }
 0x31b   :  { %v354_v4 = vadd.f32 %v435_v2, %v353_v3 }
 0x31c   :  { %v502_v5 = vpop.f32.mrf.mxu1 }
 0x31d   :  { %362 = vadd.xlane.f32.xlu0 %v354_v4 }
 0x31e   :  { %v356_v6 = vpop.f32.mrf.mxu1 }
 0x31f   :  { %v357_v7 = vadd.f32 %v435_v2, %v356_v6 }
 0x320   :  { %v503_v8 = vpop.f32.mrf.mxu1 }
 0x321   :  { %364 = vadd.xlane.f32.xlu1 %v357_v7 }
 0x3a6   :  { %v363_v11 = vpop.xlane.xlu0 %362 }
 0x3a7   :  { %v366_v12 = vmul.f32 0.03125, %v363_v11 }
 0x3a9   :  { %v368_v13 = vsub.f32 %v354_v4, %v366_v12 }
 0x3aa   :  { %v365_v14 = vpop.xlane.xlu1 %364 }
 0x3ab   :  { %v367_v15 = vmul.f32 0.03125, %v365_v14  ;;  %v370_v16 = vsel %vm77_vm1, %v368_v13, 0.0 }
 0x3ac   :  { %v372_v17 = vmul.f32 %v370_v16, %v370_v16 }
 0x3ad   :  { %v369_v18 = vsub.f32 %v357_v7, %v367_v15 }
 0x3ae   :  { %374 = vadd.xlane.f32.xlu0 %v372_v17 }
 0x3af   :  { %v371_v19 = vsel %vm77_vm1, %v369_v18, 0.0 }
 0x3b0   :  { %v373_v21 = vmul.f32 %v371_v19, %v371_v19 }
 0x3b2   :  { %376 = vadd.xlane.f32.xlu1 %v373_v21 }
 0x437   :  { %v375_v22 = vpop.xlane.xlu0 %374 }
 0x438   :  { %v378_v23 = vmul.f32 0.03125, %v375_v22 }
 0x43a   :  { %v380_v24 = vadd.f32 1e-05, %v378_v23 }
 0x43b   :  { %v377_v25 = vpop.xlane.xlu1 %376 }
 0x43c   :  { %538 = vrsqrt.f32 %v380_v24  ;;  %v379_v26 = vmul.f32 0.03125, %v377_v25 }
 0x43e   :  { %v381_v27 = vadd.f32 1e-05, %v379_v26 }
 0x440   :  { %540 = vrsqrt.f32 %v381_v27 }
 0x449   :  { %v539_v28 = vpop.eup %538 }
 0x44a   :  { %v384_v30 = vmul.f32 %v539_v28, %v370_v16 }
 0x44c   :  { %v392_v31 = vmul.f32 %v444_v29, %v384_v30 }
 0x44d   :  { %v541_v32 = vpop.eup %540 }
 0x44e   :  { %v385_v33 = vmul.f32 %v541_v32, %v371_v19  ;;  %v400_v34 = vadd.f32 %v445_v20, %v392_v31 }
 0x450   :  { %v393_v35 = vmul.f32 %v444_v29, %v385_v33  ;;  %v402_v36 = vadd.f32 %v400_v34, %v710_v9 }
 0x452   :  { %v401_v37 = vadd.f32 %v445_v20, %v393_v35  ;;  %404 = vst [vmem:[#allocation8] sm:$0xff] %v402_v36 }
 0x454   :  { %v403_v38 = vadd.f32 %v401_v37, %v712_v10 }
 0x456   :  { %405 = vst [vmem:[#allocation8 + $0x8] sm:$0xff] %v403_v38 }
 0x457   :  { %613 = shalt.err (!%p610_p5)
}
 0x458   :  { %417 = dma.vmem_to_hbm [thread:$0]  %s412_s13, 256, %s770_s9, [#allocation4], %s632_s19, %s632_s19, %s633_s20  }
 0x459   :  { %626 = dma.done.wait [#allocation4], 256  }
 0x45a   :  { %627 = vsyncadd [#allocation4], 4294967040 }
 0x45b   :  { %421 = vsyncpa [#allocation3], 1 }
 0x45c   :  { %422 = vsyncpa [#allocation6], 1 }
 0x45d   :  { %423 = vsyncpa [#allocation4], 1 }

</bundles_post_ra>
